<compile_context>
chip_gen: v6e
topology: v6e:2x2x1
jax: 0.10.0
libtpu: 0.0.40
codegen_flags: <defaults>
</compile_context>

<pallas_src>
import functools

import jax
import jax.numpy as jnp
import numpy as np
from jax.experimental import pallas as pl
from jax.experimental.pallas import tpu as pltpu


def _conv_block_kernel(x_ref, w_ref, scale_ref, bias_ref, o_ref, xp_ref,
                       *, nb, h, w_cin, w_cout):
    """Per-grid-step kernel (nb batch elements per step).

    x_ref     : (nb, H, W*Cin)      bf16 input rows (channels folded into lanes)
    w_ref     : (3, W*Cin, W*Cout)  bf16 banded conv weights (one band per kh tap)
    scale_ref : (1, W*Cout)         f32 folded BN scale, tiled over W
    bias_ref  : (1, W*Cout)         f32 folded BN bias (incl. conv bias), tiled over W
    o_ref     : (nb, H, W*Cout)     f32 conv+BN+ReLU output (lane-dense trailing dim)
    xp_ref    : (H+2, W*Cin)        bf16 VMEM scratch, row-padded input
    """
    zero_row = jnp.zeros((1, w_cin), dtype=xp_ref.dtype)
    for b in range(nb):
        # Row halo (padding=1 along H) handled in VMEM; column padding (padding=1 along W)
        # is folded into the band structure of w_ref -> no jnp.pad / extra HBM pass.
        xp_ref[0:1, :] = zero_row
        xp_ref[h + 1:h + 2, :] = zero_row
        xp_ref[1:h + 1, :] = x_ref[b]
        xp = xp_ref[...]

        # 3 MXU matmuls (one per kh tap), f32 accumulation.
        acc = jnp.zeros((h, w_cout), dtype=jnp.float32)
        for kh in range(3):
            acc = acc + jnp.dot(xp[kh:kh + h, :], w_ref[kh],
                                preferred_element_type=jnp.float32)

        # Fused BatchNorm (eval-mode, folded) + ReLU on the VPU; lane-dense store.
        y = acc * scale_ref[0] + bias_ref[0]
        o_ref[b] = jnp.maximum(y, 0.0).astype(o_ref.dtype)


def _banded_weights(w_hwio, width):
    """(3,3,Cin,Cout) HWIO conv weights -> (3, W*Cin, W*Cout) implicit-GEMM banded weights."""
    cin, cout = w_hwio.shape[2], w_hwio.shape[3]
    kw = jnp.arange(3)
    j = jnp.arange(width)   # input column
    w = jnp.arange(width)   # output column
    # Tap kw connects input column j to output column w iff j == w + kw - 1
    # (columns outside [0, W) are simply absent -> implicit zero padding along W).
    sel = (j[None, :, None] == (w[None, None, :] + kw[:, None, None] - 1)).astype(jnp.float32)
    wb = jnp.einsum('xjw,hxco->hjcwo', sel, w_hwio.astype(jnp.float32))
    return wb.reshape(3, width * cin, width * cout)


def conv_block_pallas(x_nhwc, w_hwio, conv_bias, gamma, beta, run_mean, run_var,
                      eps=1e-5, batch_block=1):
    """x_nhwc: (N, H, W, Cin) float32.  Returns conv+BN(eval)+ReLU output (N, H, W, Cout) f32."""
    N, H, W, Cin = x_nhwc.shape
    Cout = w_hwio.shape[-1]
    assert N % batch_block == 0

    # Fold BatchNorm (eval / running stats) + conv bias into per-channel scale/bias,
    # tiled over W so the kernel's trailing dim is the lane-dense W*Cout axis.
    scale = gamma / jnp.sqrt(run_var + eps)                      # (Cout,)
    bias = beta + (conv_bias - run_mean) * scale                 # (Cout,)
    scale_row = jnp.tile(scale, W).reshape(1, W * Cout).astype(jnp.float32)
    bias_row = jnp.tile(bias, W).reshape(1, W * Cout).astype(jnp.float32)

    # bf16 activations / weights; f32 accumulation happens on the MXU.
    x2d = x_nhwc.reshape(N, H, W * Cin).astype(jnp.bfloat16)     # contiguous fold of (W,Cin)
    w_band = _banded_weights(w_hwio, W).astype(jnp.bfloat16)     # (3, W*Cin, W*Cout)

    kernel = functools.partial(_conv_block_kernel, nb=batch_block, h=H,
                               w_cin=W * Cin, w_cout=W * Cout)

    out2d = pl.pallas_call(
        kernel,
        out_shape=jax.ShapeDtypeStruct((N, H, W * Cout), jnp.float32),
        grid_spec=pltpu.PrefetchScalarGridSpec(
            num_scalar_prefetch=0,
            grid=(N // batch_block,),
            in_specs=[
                pl.BlockSpec((batch_block, H, W * Cin), lambda n: (n, 0, 0)),
                pl.BlockSpec((3, W * Cin, W * Cout), lambda n: (0, 0, 0)),
                pl.BlockSpec((1, W * Cout), lambda n: (0, 0)),
                pl.BlockSpec((1, W * Cout), lambda n: (0, 0)),
            ],
            out_specs=pl.BlockSpec((batch_block, H, W * Cout), lambda n: (n, 0, 0)),
            scratch_shapes=[pltpu.VMEM((H + 2, W * Cin), jnp.bfloat16)],
        ),
        compiler_params=pltpu.CompilerParams(dimension_semantics=("parallel",)),
    )(x2d, w_band, scale_row, bias_row)

    return out2d.reshape(N, H, W, Cout)


def conv_block_ref(x_nhwc, w_hwio, conv_bias, gamma, beta, run_mean, run_var, eps=1e-5):
    """Pure-JAX reference with the same bf16-input / f32-accumulate numerics."""
    y = jax.lax.conv_general_dilated(
        x_nhwc.astype(jnp.bfloat16), w_hwio.astype(jnp.bfloat16),
        window_strides=(1, 1), padding="SAME",
        dimension_numbers=("NHWC", "HWIO", "NHWC"),
        preferred_element_type=jnp.float32)
    y = y + conv_bias
    scale = gamma / jnp.sqrt(run_var + eps)
    return jnp.maximum((y - run_mean) * scale + beta, 0.0)


if __name__ == "__main__":
    key = jax.random.PRNGKey(0)
    k_x, k_w, k_b, k_g, k_be, k_m, k_v = jax.random.split(key, 7)

    N, Cin, H, W = 2, 4, 16, 16
    Cout = 8

    # PyTorch-convention input is NCHW; move to NHWC for the TPU kernel.
    x_nchw = jax.random.normal(k_x, (N, Cin, H, W), dtype=jnp.float32)
    x_nhwc = jnp.transpose(x_nchw, (0, 2, 3, 1))

    # Conv2d weight OIHW -> HWIO; BatchNorm2d eval-mode running statistics.
    w_oihw = 0.1 * jax.random.normal(k_w, (Cout, Cin, 3, 3), dtype=jnp.float32)
    w_hwio = jnp.transpose(w_oihw, (2, 3, 1, 0))
    conv_bias = 0.05 * jax.random.normal(k_b, (Cout,), dtype=jnp.float32)
    gamma = 1.0 + 0.1 * jax.random.normal(k_g, (Cout,), dtype=jnp.float32)
    beta = 0.1 * jax.random.normal(k_be, (Cout,), dtype=jnp.float32)
    run_mean = 0.1 * jax.random.normal(k_m, (Cout,), dtype=jnp.float32)
    run_var = jnp.abs(1.0 + 0.1 * jax.random.normal(k_v, (Cout,), dtype=jnp.float32))

    out = conv_block_pallas(x_nhwc, w_hwio, conv_bias, gamma, beta, run_mean, run_var)
    jax.block_until_ready(out)

    ref = conv_block_ref(x_nhwc, w_hwio, conv_bias, gamma, beta, run_mean, run_var)
    np.testing.assert_allclose(np.asarray(out), np.asarray(ref), rtol=1e-3, atol=1e-3)

    assert out.shape == (N, H, W, Cout)
    print("KERNEL_OK")
</pallas_src>

<mosaic_0001>
module attributes {stable_mosaic.version = 11 : i64} {
  func.func @_conv_block_kernel(%arg0: i32, %arg1: memref<1x16x64xbf16, #tpu.memory_space<vmem>>, %arg2: memref<3x64x128xbf16, #tpu.memory_space<vmem>>, %arg3: memref<1x128xf32, #tpu.memory_space<vmem>>, %arg4: memref<1x128xf32, #tpu.memory_space<vmem>>, %arg5: memref<1x16x128xf32, #tpu.memory_space<vmem>>, %arg6: memref<18x64xbf16, #tpu.memory_space<vmem>>) attributes {dimension_semantics = [#tpu.dimension_semantics<parallel>], iteration_bounds = array<i64: 2>, scalar_prefetch = 0 : i64, scratch_operands = 1 : i64, tpu.core_type = #tpu.core_type<tc>, window_params = [{transform_indices = @transform_0, window_bounds = array<i64: 1, 16, 64>}, {pipeline_mode = #tpu.pipeline_mode<synchronous>, transform_indices = @transform_1, window_bounds = array<i64: 3, 64, 128>}, {pipeline_mode = #tpu.pipeline_mode<synchronous>, transform_indices = @transform_2, window_bounds = array<i64: 1, 128>}, {pipeline_mode = #tpu.pipeline_mode<synchronous>, transform_indices = @transform_3, window_bounds = array<i64: 1, 128>}, {transform_indices = @transform_4, window_bounds = array<i64: 1, 16, 128>}]} {
    %cst = arith.constant 0.000000e+00 : bf16
    %0 = vector.broadcast %cst : bf16 to vector<1x64xbf16>
    %c0 = arith.constant 0 : index
    %c0_0 = arith.constant 0 : index
    %1 = vector.load %arg6[%c0, %c0_0] : memref<18x64xbf16, #tpu.memory_space<vmem>>, vector<1x64xbf16>
    tpu.vector_store %arg6[%c0, %c0_0], %0 {strides = array<i32>} : memref<18x64xbf16, #tpu.memory_space<vmem>>, vector<1x64xbf16>,
    %c17 = arith.constant 17 : index
    %c0_1 = arith.constant 0 : index
    %2 = vector.load %arg6[%c17, %c0_1] : memref<18x64xbf16, #tpu.memory_space<vmem>>, vector<1x64xbf16>
    tpu.vector_store %arg6[%c17, %c0_1], %0 {strides = array<i32>} : memref<18x64xbf16, #tpu.memory_space<vmem>>, vector<1x64xbf16>,
    %c0_2 = arith.constant 0 : index
    %c0_3 = arith.constant 0 : index
    %c0_4 = arith.constant 0 : index
    %3 = vector.load %arg1[%c0_2, %c0_3, %c0_4] : memref<1x16x64xbf16, #tpu.memory_space<vmem>>, vector<1x16x64xbf16>
    %4 = vector.shape_cast %3 : vector<1x16x64xbf16> to vector<16x64xbf16>
    %c1 = arith.constant 1 : index
    %c0_5 = arith.constant 0 : index
    %5 = vector.load %arg6[%c1, %c0_5] : memref<18x64xbf16, #tpu.memory_space<vmem>>, vector<16x64xbf16>
    tpu.vector_store %arg6[%c1, %c0_5], %4 {strides = array<i32>} : memref<18x64xbf16, #tpu.memory_space<vmem>>, vector<16x64xbf16>,
    %c0_6 = arith.constant 0 : index
    %c0_7 = arith.constant 0 : index
    %6 = vector.load %arg6[%c0_6, %c0_7] : memref<18x64xbf16, #tpu.memory_space<vmem>>, vector<18x64xbf16>
    %cst_8 = arith.constant 0.000000e+00 : f32
    %7 = vector.broadcast %cst_8 : f32 to vector<16x128xf32>
    %8 = vector.extract_strided_slice %6 {offsets = [0, 0], sizes = [16, 64], strides = [1, 1]} : vector<18x64xbf16> to vector<16x64xbf16>
    %c0_9 = arith.constant 0 : index
    %c0_10 = arith.constant 0 : index
    %c0_11 = arith.constant 0 : index
    %9 = vector.load %arg2[%c0_9, %c0_10, %c0_11] : memref<3x64x128xbf16, #tpu.memory_space<vmem>>, vector<1x64x128xbf16>
    %10 = vector.shape_cast %9 : vector<1x64x128xbf16> to vector<64x128xbf16>
    %cst_12 = arith.constant dense<0.000000e+00> : vector<16x128xf32>
    %11 = tpu.matmul %8, %10, %cst_12 {dimension_numbers = #tpu.dot_dimension_numbers<[1], [0], [0], [1], [0, 0, 1, 1], [], []>} : vector<16x64xbf16>, vector<64x128xbf16>, vector<16x128xf32> -> vector<16x128xf32>
    %12 = arith.addf %7, %11 : vector<16x128xf32>
    %13 = vector.extract_strided_slice %6 {offsets = [1, 0], sizes = [16, 64], strides = [1, 1]} : vector<18x64xbf16> to vector<16x64xbf16>
    %c1_13 = arith.constant 1 : index
    %c0_14 = arith.constant 0 : index
    %c0_15 = arith.constant 0 : index
    %14 = vector.load %arg2[%c1_13, %c0_14, %c0_15] : memref<3x64x128xbf16, #tpu.memory_space<vmem>>, vector<1x64x128xbf16>
    %15 = vector.shape_cast %14 : vector<1x64x128xbf16> to vector<64x128xbf16>
    %cst_16 = arith.constant dense<0.000000e+00> : vector<16x128xf32>
    %16 = tpu.matmul %13, %15, %cst_16 {dimension_numbers = #tpu.dot_dimension_numbers<[1], [0], [0], [1], [0, 0, 1, 1], [], []>} : vector<16x64xbf16>, vector<64x128xbf16>, vector<16x128xf32> -> vector<16x128xf32>
    %17 = arith.addf %12, %16 : vector<16x128xf32>
    %18 = vector.extract_strided_slice %6 {offsets = [2, 0], sizes = [16, 64], strides = [1, 1]} : vector<18x64xbf16> to vector<16x64xbf16>
    %c2 = arith.constant 2 : index
    %c0_17 = arith.constant 0 : index
    %c0_18 = arith.constant 0 : index
    %19 = vector.load %arg2[%c2, %c0_17, %c0_18] : memref<3x64x128xbf16, #tpu.memory_space<vmem>>, vector<1x64x128xbf16>
    %20 = vector.shape_cast %19 : vector<1x64x128xbf16> to vector<64x128xbf16>
    %cst_19 = arith.constant dense<0.000000e+00> : vector<16x128xf32>
    %21 = tpu.matmul %18, %20, %cst_19 {dimension_numbers = #tpu.dot_dimension_numbers<[1], [0], [0], [1], [0, 0, 1, 1], [], []>} : vector<16x64xbf16>, vector<64x128xbf16>, vector<16x128xf32> -> vector<16x128xf32>
    %22 = arith.addf %17, %21 : vector<16x128xf32>
    %c0_20 = arith.constant 0 : index
    %c0_21 = arith.constant 0 : index
    %23 = vector.load %arg3[%c0_20, %c0_21] : memref<1x128xf32, #tpu.memory_space<vmem>>, vector<1x128xf32>
    %24 = vector.shape_cast %23 : vector<1x128xf32> to vector<128xf32>
    %25 = vector.shape_cast %24 : vector<128xf32> to vector<1x128xf32>
    %26 = vector.broadcast %25 : vector<1x128xf32> to vector<16x128xf32>
    %27 = arith.mulf %22, %26 : vector<16x128xf32>
    %c0_22 = arith.constant 0 : index
    %c0_23 = arith.constant 0 : index
    %28 = vector.load %arg4[%c0_22, %c0_23] : memref<1x128xf32, #tpu.memory_space<vmem>>, vector<1x128xf32>
    %29 = vector.shape_cast %28 : vector<1x128xf32> to vector<128xf32>
    %30 = vector.shape_cast %29 : vector<128xf32> to vector<1x128xf32>
    %31 = vector.broadcast %30 : vector<1x128xf32> to vector<16x128xf32>
    %32 = arith.addf %27, %31 : vector<16x128xf32>
    %cst_24 = arith.constant 0.000000e+00 : f32
    %33 = vector.broadcast %cst_24 : f32 to vector<16x128xf32>
    %34 = arith.maximumf %32, %33 : vector<16x128xf32>
    %c0_25 = arith.constant 0 : index
    %c0_26 = arith.constant 0 : index
    %c0_27 = arith.constant 0 : index
    %35 = vector.load %arg5[%c0_25, %c0_26, %c0_27] : memref<1x16x128xf32, #tpu.memory_space<vmem>>, vector<1x16x128xf32>
    %36 = vector.shape_cast %35 : vector<1x16x128xf32> to vector<16x128xf32>
    %37 = vector.shape_cast %34 : vector<16x128xf32> to vector<1x16x128xf32>
    tpu.vector_store %arg5[%c0_25, %c0_26, %c0_27], %37 {strides = array<i32>} : memref<1x16x128xf32, #tpu.memory_space<vmem>>, vector<1x16x128xf32>,
    return
  }
  func.func @transform_0(%arg0: i32) -> (i32, i32, i32) {
    %c0_i32 = arith.constant 0 : i32
    %c0_i32_0 = arith.constant 0 : i32
    %c0_i32_1 = arith.constant 0 : i32
    return %arg0, %c0_i32, %c0_i32_0 : i32, i32, i32
  }
  func.func @transform_1(%arg0: i32) -> (i32, i32, i32) {
    %c0_i32 = arith.constant 0 : i32
    %c0_i32_0 = arith.constant 0 : i32
    %c0_i32_1 = arith.constant 0 : i32
    %c0_i32_2 = arith.constant 0 : i32
    return %c0_i32, %c0_i32_0, %c0_i32_1 : i32, i32, i32
  }
  func.func @transform_2(%arg0: i32) -> (i32, i32) {
    %c0_i32 = arith.constant 0 : i32
    %c0_i32_0 = arith.constant 0 : i32
    %c0_i32_1 = arith.constant 0 : i32
    return %c0_i32, %c0_i32_0 : i32, i32
  }
  func.func @transform_3(%arg0: i32) -> (i32, i32) {
    %c0_i32 = arith.constant 0 : i32
    %c0_i32_0 = arith.constant 0 : i32
    %c0_i32_1 = arith.constant 0 : i32
    return %c0_i32, %c0_i32_0 : i32, i32
  }
  func.func @transform_4(%arg0: i32) -> (i32, i32, i32) {
    %c0_i32 = arith.constant 0 : i32
    %c0_i32_0 = arith.constant 0 : i32
    %c0_i32_1 = arith.constant 0 : i32
    return %arg0, %c0_i32, %c0_i32_0 : i32, i32, i32
  }
}

</mosaic_0001>

<bundles_post_ra>
// kernel: tpu_custom_call.1
= control target key start
LH: loop header
LB: loop body
LE: loop exit
PB: predicated region body
PF: predicated region fallthrough
CT: control target
= control target key end

     0   :  { %9 = vsyncpa [#allocation4], 0  ;;  %s1213_s0 = inlined_call_operand.hbm [shape: bf16[2,16,64], index: 0, kind: input, shape index: {}]   ;;  %s1214_s1 = inlined_call_operand.hbm [shape: bf16[3,64,128], index: 1, kind: input, shape index: {}]   ;;  %s1215_s2 = inlined_call_operand.vmem [shape: f32[1,128], index: 2, kind: input, shape index: {}]   ;;  %s1216_s3 = inlined_call_operand.vmem [shape: f32[1,128], index: 3, kind: input, shape index: {}]   ;;  %s1217_s4 = inlined_call_operand.hbm [shape: f32[2,16,128], index: 4, kind: output, shape index: {}]  }
   0x1   :  { %11 = vsyncpa [#allocation4 + $0x1], 0 }
   0x2   :  { %12 = vsyncpa [#allocation7], 0 }
   0x3   :  { %13 = vsyncpa [#allocation5], 0 }
   0x4   :  { %15 = vsyncpa [#allocation5 + $0x1], 0  ;;  %s979_s15 = smov 0   ;;  %s981_s16 = smov 0  }
   0x5   :  { %s983_s17 = smov 0   ;;  %s985_s18 = smov 0  }
   0x6 LB: > { %s1000_s19 = sadd.s32 4294967295, %s943_s18   ;;  %s656_s20 = sadd.s32 4294967294, %s943_s18   ;;  %s943_s18 = sphi %s985_s18, %s1243_s18   ;;  %s939_s17 = sphi %s983_s17, %s1242_s17   ;;  %s935_s16 = sphi %s981_s16, %s1241_s16   ;;  %s931_s15 = sphi %s979_s15, %s1240_s15  }
   0x7   : > { %p41_p0 = scmp.ne.s32.totalorder %s935_s16, %s931_s15  ;;  %p1218_p1 = scmp.eq.s32.totalorder %s1000_s19, 0 }
   0x8   : > { %p134_p3 = scmp.eq.s32.totalorder %s656_s20, 1  ;;  %p657_p5 = scmp.ge.s32.totalorder %s943_s18, 1 }
   0x9   : > { %p1009_p4 = por %p1218_p1, %p41_p0  ;;  %p141_p7 = scmp.lt.s32.totalorder %s943_s18, 3 }
   0xa   : > { %p1014_p6 = por %p134_p3, %p41_p0  ;;  %s945_s24 = smov [#allocation6]  }
   0xb   : > { %s1222_s21 = scalar_select %p1009_p4, 1, 0 }
   0xc   : > { %s1223_s22 = scalar_select %p1014_p6, 1, 0 }
   0xd   : > { %p1019_p8 = pnand %p657_p5, %p141_p7  ;;  %s153_s25 = sshll.u32 %s945_s24, 4  ;;  %s154_s25 = int_to_ptr.vmem [resolvable:$true] %s153_s25 }
   0xe   : > { %s1033_s27 = sadd.s32 1, %s943_s18   ;;  %s28_s28 = sadd.s32 1, %s939_s17 }
   0xf   : > { %s1224_s23 = scalar_select %p1019_p8, 1, 0 }
  0x10   : > { %p752_p9 = pneg %p1019_p8  ;;  %s25_s29 = ssub.s32 %s943_s18, %s1033_s27 }
  0x11   : > { %s832_s30 = scalar_lea.vmem %s154_s25, 1536  ;;  %p840_p5 = scmp.lt.s32.totalorder %s154_s25, %s154_s25 }
  0x12   : > { %p1028_p11 = pnand %p752_p9, %p1218_p1  ;;  %p833_p13 = scmp.ne.s32.totalorder %s154_s25, %s832_s30 }
  0x13   : > { %p841_p7 = scmp.lt.s32.totalorder %s832_s30, %s832_s30 }
  0x14   : > { %p823_p12 = pneg %p1028_p11 }
  0x15   : > { %p842_p10 = por %p841_p7, %p840_p5 }
  0x16   : > { %p835_p0 = pnand %p833_p13, %p823_p12 }
  0x18   : > { %p836_p3 = pneg %p835_p0 }
  0x1a   : > { %p843_p2 = pnand %p842_p10, %p836_p3 }
  0x1c   : > { %846 = shalt.err (!%p843_p2)
}
  0x1d   : > { %s946_s5 = smov 64   ;;  %s947_s6 = smov 4  }
  0x1e   : > { %755 = dma.hbm_to_vmem [thread:$0]  (!%p1028_p11), %s1214_s1, 1536, %s154_s25, [#allocation7], %s946_s5, %s946_s5, %s947_s6  }
  0x1f   : > { %p26_p2 = scmp.eq.s32.totalorder %s25_s29, 0  ;;  %p35_p9 = scmp.ne.s32.totalorder %s939_s17, %s935_s16 }
  0x20   : > { %p36_p10 = scmp.eq.s32.totalorder %s943_s18, 0  ;;  %p765_p12 = scmp.lt.s32.totalorder %s943_s18, 2 }
  0x21   : > { %s1053_s9 = scalar_select %p26_p2, %s939_s17, %s28_s28  }
  0x22   : > { %p37_p13 = por %p36_p10, %p35_p9  ;;  %p1226_p0 = scmp.eq.s32.totalorder %s1000_s19, 1 }
  0x23   : > { %s173_s11 = sand.u32 1, %s939_s17   ;;  %s691_s12 = sshll.u32 %s943_s18, 7 }
  0x24   : > { %p1057_p3 = por %p1226_p0, %p35_p9  ;;  %s660_s13 = sshll.u32 %s173_s11, 3 }
  0x25   : > { %s1066_s24 = scalar_lea.hbm %s1213_s0, %s691_s12  ;;  %s177_s25 = scalar_lea.vmem [#allocation3], %s660_s13 }
  0x26   : > { %s1227_s10 = scalar_select %p1057_p3, 1, 0 }
  0x27   : > { %s184_s26 = sshll.u32 %s177_s25, 4  ;;  %p1068_p11 = pnand %p765_p12, %p37_p13  ;;  %s1072_s26 = int_to_ptr.vmem [resolvable:$true] %s184_s26 }
  0x28   : > { %s1074_s29 = scalar_lea.sflag [#allocation4], %s173_s11  ;;  %s847_s30 = scalar_lea.hbm %s1066_s24, 128 }
  0x29   : > { %p848_p5 = scmp.ne.s32.totalorder %s1066_s24, %s847_s30  ;;  %p849_p7 = pneg %p1068_p11 }
  0x2a   : > { %s852_s12 = scalar_lea.hbm %s1213_s0, 256  ;;  %p853_p10 = scmp.lt.s32.totalorder %s1066_s24, %s1213_s0 }
  0x2b   : > { %p850_p2 = pnand %p849_p7, %p848_p5  ;;  %p854_p12 = scmp.lt.s32.totalorder %s852_s12, %s847_s30 }
  0x2d   : > { %p851_p9 = pneg %p850_p2  ;;  %p855_p13 = por %p854_p12, %p853_p10 }
  0x2f   : > { %p856_p0 = pnand %p855_p13, %p851_p9 }
  0x31   : > { %859 = shalt.err (!%p856_p0)
}
  0x32   : > { %s860_s11 = scalar_lea.vmem %s1072_s26, 128  ;;  %s948_s20 = smov [#allocation3]  }
  0x33   : > { %p861_p1 = scmp.ne.s32.totalorder %s1072_s26, %s860_s11  ;;  %s865_s25 = sshll.u32 %s948_s20, 4  ;;  %s866_s25 = int_to_ptr.vmem [resolvable:$false] %s865_s25 }
  0x34   : > { %s867_s7 = scalar_lea.vmem %s866_s25, 256  ;;  %p868_p2 = scmp.lt.s32.totalorder %s1072_s26, %s866_s25 }
  0x35   : > { %p863_p6 = pnand %p861_p1, %p849_p7  ;;  %p869_p3 = scmp.lt.s32.totalorder %s867_s7, %s860_s11 }
  0x37   : > { %p864_p5 = pneg %p863_p6  ;;  %p870_p4 = por %p869_p3, %p868_p2 }
  0x39   : > { %p871_p8 = pnand %p870_p4, %p864_p5 }
  0x3b   : > { %874 = shalt.err (!%p871_p8)
}
  0x3c   : > { %759 = dma.hbm_to_vmem [thread:$0]  (!%p1068_p11), %s1066_s24, 128, %s1072_s26, %s1074_s29, %s946_s5, %s946_s5, %s947_s6  }
  0x3d   : > { %p1229_p1 = scmp.ne.s32.totalorder %s1224_s23, 0 }
  0x3e   : > { %s1101_s30 = sand.u32 (!%p1229_p1), 1, %s935_s16   ;;  %p1230_p4 = scmp.ne.s32.totalorder (!%p1229_p1), %s1222_s21, 0 }
  0x3f   : > { %196 = sbr.rel (%p1229_p1) target bundleno = 337 (0x151), region = 36  ;;  %s664_s8 = sshll.u32 (!%p1229_p1), %s1101_s30, 3 }
  0x40   : > { %s199_s12 = scalar_lea.sflag (!%p1229_p1), [#allocation4], %s1101_s30  ;;  %s1105_s13 = scalar_lea.vmem (!%p1229_p1), [#allocation3], %s664_s8 }
  0x44   : > { %918 = dma.done.wait (%p1230_p4), %s199_s12, 128  }
  0x45   : > { %920 = vsyncadd (%p1230_p4), %s199_s12, 4294967168  ;;  %p1231_p6 = scmp.eq.s32.totalorder %s1000_s19, 0 }
  0x47   : > { %922 = dma.done.wait (%p1231_p6), [#allocation7], 1536   ;;  %p1232_p8 = pmov %p1231_p6 }
  0x48   : > { %v949_v0 = vmov 0.0   ;;  %vm950_vm0 = vmmov 0   ;;  %vm233_vm1 = vsmask.f32 256  ;;  %vm238_vm2 = vsmask.f32 7938 }
  0x49   : > { %924 = vsyncadd (%p1232_p8), [#allocation7], 4294965760  ;;  %708 = vmatprep.subr.bf16.mxu0 %v949_v0  ;;  %720 = vmatprep.subr.bf16.mxu1 %v949_v0  ;;  %v807_v1 = vld [vmem:[#allocation6 + $0x38] sm:$0xff]   ;;  %vm232_vm3 = vcmask 516096   ;;  %v809_v3 = vld [vmem:[#allocation6 + $0x30] sm:$0xff]   ;;  %vm267_vm7 = vcmask 519168  }
  0x4a   : > { %716 = vmatprep.mubr.msk.bf16.mxu0 %vm950_vm0, %v949_v0  ;;  %728 = vmatprep.mubr.msk.bf16.mxu1 %vm950_vm0, %v949_v0  ;;  %v808_v2 = vld [vmem:[#allocation6 + $0x18] sm:$0xff]   ;;  %v810_v4 = vld [vmem:[#allocation6 + $0x10] sm:$0xff]   ;;  %vm1124_vm4 = vmand %vm232_vm3, %vm233_vm1  ;;  %vm245_vm6 = vsmask.f32 4368  ;;  %vm342_vm10 = vcmask 523264   ;;  %vm463_vm12 = vcmask 1046528  }
  0x4b   : > { %709 = vmatpush3.bf16.msra.mxu0 %v807_v1  ;;  %721 = vmatpush3.bf16.msra.mxu1 %v808_v2  ;;  %vm1129_vm5 = vmand %vm232_vm3, %vm238_vm2  ;;  %v811_v7 = vld [vmem:[#allocation6 + $0x28] sm:$0xff]   ;;  %v813_v9 = vld [vmem:[#allocation6 + $0x20] sm:$0xff]   ;;  %vm305_vm11 = vsmask.f32 7424  ;;  %s666_s5 = sshll.u32 %s1101_s30, 4  ;;  %s692_s29 = sshll.u32 %s1000_s19, 8 }
  0x4c   : > { %710 = vmatprep.subr.bf16.mxu0 %v949_v0  ;;  %722 = vmatprep.subr.bf16.mxu1 %v949_v0  ;;  %v812_v8 = vld [vmem:[#allocation6 + $0x8] sm:$0xff]   ;;  %v235_v10 = vld [vmem:[#allocation2] sm:$0x1]  ;;  %v243_v12 = vld [vmem:[%s1105_s13] sm:$0xf]  ;;  %s230_s26 = scalar_lea.vmem [#allocation8], %s666_s5  ;;  %s1170_s20 = scalar_lea.hbm %s1217_s4, %s692_s29 }
  0x4d   : > { %v240_v11 = vld [vmem:[#allocation2 + $0x8] sm:$0x1]  ;;  %v236_v13 = vsel %vm1124_vm4, 0, %v235_v10  ;;  %v244_v15 = vld [vmem:[%s1105_s13 + $0x4] sm:$0xf]  ;;  %v248_v16 = vshrl.u32 %v243_v12, 16  ;;  %vm246_vm8 = vmor %vm233_vm1, %vm245_vm6 }
  0x4e   : > { %v241_v14 = vsel %vm1129_vm5, 0, %v240_v11  ;;  %v251_v17 = vshll.u32 %v243_v12, 16  ;;  %237 = vst [vmem:[#allocation2] sm:$0x1] %v236_v13  ;;  %v256_v18 = vshrl.u32 %v244_v15, 16  ;;  %v259_v19 = vshll.u32 %v244_v15, 16  ;;  %vm268_vm9 = vmand %vm267_vm7, %vm238_vm2 }
  0x4f   : > { %711 = vmatpush3.bf16.msra.mxu0 %v809_v3  ;;  %723 = vmatpush3.bf16.msra.mxu1 %v810_v4  ;;  %242 = vst [vmem:[#allocation2 + $0x8] sm:$0x1] %v241_v14  ;;  %v814_v20 = vld [vmem:[#allocation6] sm:$0xff]   ;;  %v250_v21 = vrot.slane %v248_v16, 7  ;;  %v817_v40 = vld [vmem:[#allocation6 + $0x58] sm:$0xff]   ;;  %v818_v42 = vld [vmem:[#allocation6 + $0x50] sm:$0xff]  }
  0x50   : > { %712 = vmatprep.subr.bf16.mxu0 %v949_v0  ;;  %724 = vmatprep.subr.bf16.mxu1 %v949_v0  ;;  %v258_v22 = vrot.slane %v256_v18, 7  ;;  %v819_v43 = vld [vmem:[#allocation6 + $0x48] sm:$0xff]   ;;  %v820_v44 = vld [vmem:[#allocation6 + $0x40] sm:$0xff]   ;;  %s573_s28 = sshll.u32 %s230_s26, 4  ;;  %s560_s25 = scalar_lea.sflag [#allocation5], %s1101_s30  ;;  %s1165_s28 = int_to_ptr.vmem [resolvable:$true] %s573_s28 }
  0x51   : > { %v254_v23 = vrot.slane %v250_v21, 4  ;;  %v253_v24 = vor.u32 %v251_v17, %v250_v21  ;;  %v684_v58 = vld [vmem:[%s1215_s2] ss:$0 sm:$0xff]  ;;  %s875_s7 = scalar_lea.vmem %s1165_s28, 256  ;;  %p1237_p11 = scmp.ne.s32.totalorder %s1227_s10, 0 }
  0x52   : > { %v261_v25 = vor.u32 %v259_v19, %v258_v22  ;;  %v263_v26 = vrot.slane %v258_v22, 4  ;;  %v685_v60 = vld [vmem:[%s1216_s3] ss:$0 sm:$0xff]  ;;  %p876_p3 = scmp.ne.s32.totalorder %s1165_s28, %s875_s7  ;;  %s951_s19 = smov [#allocation8]  }
  0x53   : > { %713 = vmatpush3.bf16.msra.mxu0 %v811_v7  ;;  %725 = vmatpush3.bf16.msra.mxu1 %v812_v8  ;;  %s879_s8 = sshll.u32 %s951_s19, 4  ;;  %s880_s8 = int_to_ptr.vmem [resolvable:$false] %s879_s8 }
  0x54   : > { %714 = vmatprep.subr.bf16.mxu0 %v949_v0  ;;  %726 = vmatprep.subr.bf16.mxu1 %v949_v0  ;;  %v262_v27 = vsel %vm246_vm8, %v254_v23, %v261_v25  ;;  %p877_p7 = pnand %p876_p3, %p1237_p11  ;;  %s881_s12 = scalar_lea.vmem %s880_s8, 512 }
  0x55   : > { %v269_v28 = vld [vmem:[#allocation2] sm:$0xf]  ;;  %273 = vst.msk [vmem:[#allocation2 + $0x4] sm:$0xf] %vm267_vm7, %v262_v27  ;;  %p882_p10 = scmp.lt.s32.totalorder %s1165_s28, %s880_s8  ;;  %p883_p12 = scmp.lt.s32.totalorder %s881_s12, %s875_s7 }
  0x56   : > { %v274_v29 = vld [vmem:[#allocation2 + $0x8] sm:$0x1]  ;;  %v270_v30 = vsel %vm268_vm9, %v253_v24, %v269_v28  ;;  %p878_p9 = pneg %p877_p7 }
  0x57   : > { %715 = vmatpush3.bf16.msra.mxu0 %v813_v9  ;;  %727 = vmatpush3.bf16.msra.mxu1 %v814_v20  ;;  %v275_v31 = vsel %vm1124_vm4, %v263_v26, %v274_v29  ;;  %271 = vst [vmem:[#allocation2] sm:$0xf] %v270_v30  ;;  %p884_p13 = por %p883_p12, %p882_p10 }
  0x58   : > { %732 = vmatprep.subr.bf16.mxu0 %v949_v0  ;;  %276 = vst [vmem:[#allocation2 + $0x8] sm:$0x1] %v275_v31 }
  0x59   : > { %p885_p0 = pnand %p884_p13, %p878_p9 }
  0x5e   : > { %v815_v32 = vld [vmem:[#allocation2] sm:$0xff]  }
  0x5f   : > { %v816_v33 = vld [vmem:[#allocation2 + $0x8] ss:$0 sps:$4 sm:$0x11]   ;;  %v307_v34 = vshrl.u32 %v815_v32, 16  ;;  %v309_v35 = vshll.u32 %v815_v32, 16  ;;  %729 = vmatmul.mubr.msk.bf16.vlgmr.msra.gmra.mxu1 %vm342_vm10, %v815_v32  ;;  %v464_v45 = vrot.slane %v815_v32, 1 }
  0x60   : > { %v314_v36 = vshll.u32 %v816_v33, 16  ;;  %v465_v46 = vrot.slane %v816_v33, 1 }
  0x61   : > { %v311_v37 = vrot.slane %v309_v35, 1 }
  0x62   : > { %v316_v38 = vrot.slane %v314_v36, 1  ;;  %v466_v47 = vsel %vm463_vm12, %v464_v45, %v465_v46 }
  0x63   : > { %v312_v39 = vor.u32 %v311_v37, %v307_v34 }
  0x65   : > { %v317_v41 = vsel %vm305_vm11, %v312_v39, %v316_v38 }
  0x66   : > { %717 = vmatmul.mubr.msk.bf16.vlgmr.msra.gmra.mxu0 %vm342_vm10, %v317_v41 }
  0x67   : > { %733 = vmatpush3.bf16.msra.mxu0 %v817_v40  ;;  %740 = vmatprep.mubr.msk.bf16.mxu0 %vm950_vm0, %v949_v0 }
  0x68   : > { %734 = vmatprep.subr.bf16.mxu0 %v949_v0 }
  0x6b   : > { %735 = vmatpush3.bf16.msra.mxu0 %v818_v42 }
  0x6c   : > { %736 = vmatprep.subr.bf16.mxu0 %v949_v0 }
  0x6f   : > { %737 = vmatpush3.bf16.msra.mxu0 %v819_v43 }
  0x70   : > { %738 = vmatprep.subr.bf16.mxu0 %v949_v0 }
  0x73   : > { %739 = vmatpush3.bf16.msra.mxu0 %v820_v44 }
  0x76   : > { %741 = vmatmul.mubr.msk.bf16.vlgmr.msra.gmra.mxu0 %vm342_vm10, %v466_v47 }
 0x11f   : > { %v447_v48 = vpop.f32.mrf.mxu1 }
 0x121   : > { %v730_v49 = vpop.f32.mrf.mxu1 }
 0x123   : > { %v450_v50 = vpop.f32.mrf.mxu1 }
 0x125   : > { %v731_v51 = vpop.f32.mrf.mxu1 }
 0x126   : > { %v380_v52 = vpop.f32.mrf.mxu0 }
 0x127   : > { %v448_v56 = vadd.f32 %v447_v48, %v380_v52 }
 0x128   : > { %v718_v53 = vpop.f32.mrf.mxu0 }
 0x12a   : > { %v383_v54 = vpop.f32.mrf.mxu0 }
 0x12b   : > { %v451_v62 = vadd.f32 %v450_v50, %v383_v54 }
 0x12c   : > { %v719_v55 = vpop.f32.mrf.mxu0 }
 0x136   : > { %v528_v57 = vpop.f32.mrf.mxu0 }
 0x137   : > { %v535_v59 = vadd.f32 %v528_v57, %v448_v56 }
 0x138   : > { %v742_v61 = vpop.f32.mrf.mxu0 }
 0x139   : > { %v544_v63 = vmul.f32 %v684_v58, %v535_v59 }
 0x13a   : > { %v531_v0 = vpop.f32.mrf.mxu0 }
 0x13b   : > { %v553_v1 = vadd.f32 %v685_v60, %v544_v63  ;;  %v536_v2 = vadd.f32 %v531_v0, %v451_v62 }
 0x13c   : > { %v743_v3 = vpop.f32.mrf.mxu0 }
 0x13d   : > { %v555_v4 = vmax.f32 %v553_v1, 0.0  ;;  %v545_v5 = vmul.f32 %v684_v58, %v536_v2 }
 0x13f   : > { %557 = vst [vmem:[%s230_s26] sm:$0xff] %v555_v4  ;;  %v554_v6 = vadd.f32 %v685_v60, %v545_v5 }
 0x141   : > { %v556_v7 = vmax.f32 %v554_v6, 0.0 }
 0x143   : > { %558 = vst [vmem:[%s230_s26 + $0x8] sm:$0xff] %v556_v7 }
 0x144   : > { %888 = shalt.err (!%p885_p0)
}
 0x145   : > { %s889_s13 = scalar_lea.hbm %s1170_s20, 256  ;;  %s893_s5 = scalar_lea.hbm %s1217_s4, 512 }
 0x146   : > { %p890_p5 = scmp.ne.s32.totalorder %s1170_s20, %s889_s13  ;;  %p894_p4 = scmp.lt.s32.totalorder %s1170_s20, %s1217_s4 }
 0x147   : > { %p895_p6 = scmp.lt.s32.totalorder %s893_s5, %s889_s13 }
 0x148   : > { %p891_p2 = pnand %p890_p5, %p1237_p11 }
 0x149   : > { %p896_p8 = por %p895_p6, %p894_p4 }
 0x14a   : > { %p892_p1 = pneg %p891_p2 }
 0x14c   : > { %p897_p3 = pnand %p896_p8, %p892_p1 }
 0x14e   : > { %900 = shalt.err (!%p897_p3)
}
 0x14f   : > { %s952_s26 = smov 128   ;;  %s953_s29 = smov 8  }
 0x150   : > { %750 = dma.vmem_to_hbm [thread:$0]  (%p1237_p11), %s1165_s28, 256, %s1170_s20, %s560_s25, %s952_s26, %s952_s26, %s953_s29  }
 0x151 PF: > { %s588_s14 = sand.u32 1, %s931_s15   ;;  %p1238_p7 = scmp.ne.s32.totalorder %s1223_s22, 0 }
 0x152   : > { %p1239_p9 = scmp.ge.s32.totalorder %s943_s18, 2  ;;  %s589_s11 = scalar_lea.sflag [#allocation5], %s588_s14 }
 0x154   : > { %p761_p10 = pnand %p1239_p9, %p1238_p7 }
 0x156   : > { %p762_p12 = pneg %p761_p10 }
 0x158   : > { %926 = dma.done.wait (%p762_p12), %s589_s11, 256  }
 0x159   : > { %928 = vsyncadd (%p762_p12), %s589_s11, 4294967040  ;;  %p18_p13 = scmp.ge.s32.totalorder %s1033_s27, 4   ;;  %s1240_s15 = smov %s935_s16 }
 0x15a   : > { %s1241_s16 = smov %s939_s17  ;;  %s1242_s17 = smov %s1053_s9 }
 0x15b   : > { %s1243_s18 = smov %s1033_s27  ;;  %20 = sbr.rel (!%p18_p13) target bundleno = 6 (0x6), region = 87 }
 0x160   :  { %594 = vsyncpa [#allocation4], 1 }
 0x161   :  { %596 = vsyncpa [#allocation4 + $0x1], 1 }
 0x162   :  { %597 = vsyncpa [#allocation7], 1 }
 0x163   :  { %598 = vsyncpa [#allocation5], 1 }
 0x164   :  { %600 = vsyncpa [#allocation5 + $0x1], 1 }

</bundles_post_ra>
